<compile_context>
chip_gen: v7x
topology: tpu7x:2x2x1
jax: 0.10.0
libtpu: 0.0.40
codegen_flags: <defaults>
</compile_context>

<pallas_src>
import math
import functools

import jax
import jax.numpy as jnp
from jax import lax
from jax.experimental import pallas as pl
from jax.experimental.pallas import tpu as pltpu


# ------------------------------ Pallas kernel ------------------------------

def _cross_attn_kernel(h_ref, c_ref, m_ref,
                       wq_ref, bq_ref, wkv_ref, bkv_ref,
                       ctx_ref, scores_ref,
                       k_scratch, v_scratch,
                       *, head_dim):
    """One (batch, head, q-row-tile) grid step of BertOutAttention.

    Blocks:
      h_ref       (1, TQ, Dq)   bf16   query-side activations (one row tile)
      c_ref       (1, Lk, Dc)   bf16   context activations (full key length)
      m_ref       (1, 1,  Lk)   f32    additive key mask (broadcast over rows)
      wq_ref      (1, Dq, dh)   bf16   per-head Q weights (1/sqrt(dh) folded in)
      bq_ref      (1, 1,  dh)   f32
      wkv_ref     (1, Dc, 2dh)  bf16   per-head fused [K | V] weights
      bkv_ref     (1, 1,  2dh)  f32
      ctx_ref     (1, 1, TQ, dh)       per-head context output
      scores_ref  (1, 1, TQ, Lk) f32   masked pre-softmax scores (module output)
      k/v_scratch (Lk, dh)      bf16   per-(batch, head) K / V, reused over q tiles
    """
    t = pl.program_id(2)
    cdt = k_scratch.dtype   # matmul compute dtype (bf16)

    # K / V projections only once per (batch, head); query tiles (innermost
    # grid axis) reuse the VMEM scratch.  Single fused [K|V] matmul.
    @pl.when(t == 0)
    def _():
        c = c_ref[0]                                                 # (Lk, Dc)
        kv = jnp.dot(c, wkv_ref[0],
                     preferred_element_type=jnp.float32) + bkv_ref[0]  # (Lk, 2dh)
        k_scratch[...] = kv[:, :head_dim].astype(cdt)
        v_scratch[...] = kv[:, head_dim:].astype(cdt)

    # Q projection for this row tile (scale already folded into wq / bq).
    x = h_ref[0]                                                     # (TQ, Dq)
    q = jnp.dot(x, wq_ref[0], preferred_element_type=jnp.float32) + bq_ref[0]

    # scores = q @ k^T, contracting the head dim, f32 MXU accumulation.
    scores = lax.dot_general(
        q.astype(cdt), k_scratch[...],
        dimension_numbers=(((1,), (1,)), ((), ())),
        preferred_element_type=jnp.float32)                          # (TQ, Lk)
    scores = scores + m_ref[0]                                       # (1, Lk) broadcast
    scores_ref[0, 0] = scores.astype(scores_ref.dtype)

    # Softmax in f32 (attention-prob dropout is identity in eval mode).
    m = jnp.max(scores, axis=-1, keepdims=True)
    p = jnp.exp(scores - m)
    denom = jnp.sum(p, axis=-1, keepdims=True)
    p = p * pl.reciprocal(denom, approx=True)

    ctx = jnp.dot(p.astype(cdt), v_scratch[...],
                  preferred_element_type=jnp.float32)                # (TQ, dh)
    ctx_ref[0, 0] = ctx.astype(ctx_ref.dtype)


# --------------------------------- wrapper ----------------------------------

def bert_out_attention_pallas(hidden_states, context, attention_mask, params, *,
                              num_heads, q_block=None,
                              compute_dtype=jnp.bfloat16):
    """BertOutAttention.forward.  Returns (context_layer, attention_scores).

    params: wq (Dq, D), wk/wv (Dc, D), bq/bk/bv (D,)  with  y = x @ W + b.
    attention_mask: None, (B, Lk) or the standard BERT extended mask
    (B, 1, 1, Lk) — an additive key mask, constant over heads / query rows.
    """
    B, Lq, Dq = hidden_states.shape
    Bc, Lk, Dc = context.shape
    assert Bc == B
    D = params["wq"].shape[1]
    assert D % num_heads == 0
    H = num_heads
    dh = D // H
    scale = 1.0 / math.sqrt(dh)

    tq = Lq if q_block is None else q_block
    assert Lq % tq == 0 and (tq == Lq or tq % 8 == 0), \
        "q_block must divide Lq and be a multiple of 8"
    n_qt = Lq // tq

    # (B, 1, Lk) additive key mask only (never materialize (B, H, Lq, Lk)).
    if attention_mask is None:
        mask = jnp.zeros((B, 1, Lk), jnp.float32)
    else:
        mask = jnp.asarray(attention_mask, jnp.float32).reshape(B, -1, Lk)[:, :1, :]

    # Per-head weight slices: (in, H*dh) -> (H, in, dh); bf16 for the MXU path.
    def split_w(w):
        din = w.shape[0]
        return w.reshape(din, H, dh).transpose(1, 0, 2)

    def split_b(b):
        return b.reshape(H, 1, dh)

    # Fold 1/sqrt(dh) into the Q projection (scores come out pre-scaled).
    wq = (split_w(params["wq"]) * scale).astype(compute_dtype)
    bq = (split_b(params["bq"]) * scale).astype(jnp.float32)
    # Fused [K | V] per-head weights: (H, Dc, 2*dh) -> one wider MXU matmul.
    wkv = jnp.concatenate([split_w(params["wk"]), split_w(params["wv"])],
                          axis=-1).astype(compute_dtype)
    bkv = jnp.concatenate([split_b(params["bk"]), split_b(params["bv"])],
                          axis=-1).astype(jnp.float32)

    h_c = hidden_states.astype(compute_dtype)
    c_c = context.astype(compute_dtype)

    grid = (B, H, n_qt)
    in_specs = [
        pl.BlockSpec((1, tq, Dq), lambda b, h, t: (b, t, 0)),     # hidden row tile
        pl.BlockSpec((1, Lk, Dc), lambda b, h, t: (b, 0, 0)),     # context (resident over h, t)
        pl.BlockSpec((1, 1, Lk), lambda b, h, t: (b, 0, 0)),      # additive key mask
        pl.BlockSpec((1, Dq, dh), lambda b, h, t: (h, 0, 0)),     # wq[h] (pre-scaled)
        pl.BlockSpec((1, 1, dh), lambda b, h, t: (h, 0, 0)),      # bq[h]
        pl.BlockSpec((1, Dc, 2 * dh), lambda b, h, t: (h, 0, 0)),  # wkv[h]
        pl.BlockSpec((1, 1, 2 * dh), lambda b, h, t: (h, 0, 0)),   # bkv[h]
    ]
    out_specs = [
        pl.BlockSpec((1, 1, tq, dh), lambda b, h, t: (b, h, t, 0)),   # per-head context
        pl.BlockSpec((1, 1, tq, Lk), lambda b, h, t: (b, h, t, 0)),   # attention scores
    ]
    out_shape = [
        jax.ShapeDtypeStruct((B, H, Lq, dh), hidden_states.dtype),
        jax.ShapeDtypeStruct((B, H, Lq, Lk), jnp.float32),
    ]
    scratch_shapes = [
        pltpu.VMEM((Lk, dh), compute_dtype),   # K[h]
        pltpu.VMEM((Lk, dh), compute_dtype),   # V[h]
    ]

    flops = 2 * B * (Lq * Dq * D + 2 * Lk * Dc * D + 2 * Lq * Lk * D)
    bytes_accessed = (h_c.size * 2 * H + c_c.size * 2 + mask.size * 4
                      + (wq.size + wkv.size) * 2 * B
                      + (bq.size + bkv.size) * 4 * B
                      + B * H * Lq * dh * hidden_states.dtype.itemsize
                      + B * H * Lq * Lk * 4)
    cost = pl.CostEstimate(flops=flops, transcendentals=B * H * Lq * Lk,
                           bytes_accessed=bytes_accessed)

    kernel = functools.partial(_cross_attn_kernel, head_dim=dh)

    ctx_heads, scores = pl.pallas_call(
        kernel,
        out_shape=out_shape,
        grid_spec=pltpu.PrefetchScalarGridSpec(
            num_scalar_prefetch=0,
            grid=grid,
            in_specs=in_specs,
            out_specs=out_specs,
            scratch_shapes=scratch_shapes,
        ),
        compiler_params=pltpu.CompilerParams(
            dimension_semantics=("parallel", "parallel", "arbitrary")),
        cost_estimate=cost,
    )(h_c, c_c, mask, wq, bq, wkv, bkv)

    # Merge heads (same permute + view as the PyTorch module); layout plumbing
    # kept in the wrapper so the kernel writes full-array-dim blocks only.
    context_layer = ctx_heads.transpose(0, 2, 1, 3).reshape(B, Lq, D)
    return context_layer, scores


# ----------------------------- pure-JAX reference ---------------------------

def bert_out_attention_ref(hidden_states, context, attention_mask, params, *, num_heads):
    B, Lq, _ = hidden_states.shape
    _, Lk, _ = context.shape
    D = params["wq"].shape[1]
    dh = D // num_heads

    q = hidden_states @ params["wq"] + params["bq"]
    k = context @ params["wk"] + params["bk"]
    v = context @ params["wv"] + params["bv"]

    def split(x, L):
        return x.reshape(B, L, num_heads, dh).transpose(0, 2, 1, 3)

    q, k, v = split(q, Lq), split(k, Lk), split(v, Lk)
    scores = jnp.einsum("bhqd,bhkd->bhqk", q, k) / math.sqrt(dh)
    if attention_mask is not None:
        scores = scores + attention_mask
    probs = jax.nn.softmax(scores, axis=-1)
    ctx = jnp.einsum("bhqk,bhkd->bhqd", probs, v)
    ctx = ctx.transpose(0, 2, 1, 3).reshape(B, Lq, D)
    return ctx, scores


# ----------------------------------- main ------------------------------------

if __name__ == "__main__":
    B, Lq, Lk = 2, 16, 8
    HIDDEN, CTX_DIM, H = 32, 48, 4          # hidden_size=32, ctx_dim=48, dh=8

    key = jax.random.PRNGKey(0)
    k_h, k_c, kq, kk, kv, kbq, kbk, kbv = jax.random.split(key, 8)

    hidden = jax.random.normal(k_h, (B, Lq, HIDDEN), dtype=jnp.float32)
    context = jax.random.normal(k_c, (B, Lk, CTX_DIM), dtype=jnp.float32)

    # Standard BERT extended attention mask: (B, 1, 1, Lk), 0 valid / -10000 pad.
    lengths = jnp.array([Lk, Lk - 2], dtype=jnp.int32)
    valid = (jnp.arange(Lk)[None, :] < lengths[:, None]).astype(jnp.float32)
    attention_mask = ((1.0 - valid) * -10000.0)[:, None, None, :]

    std = 0.02
    params = {
        "wq": jax.random.normal(kq, (HIDDEN, HIDDEN), jnp.float32) * std,
        "bq": jax.random.normal(kbq, (HIDDEN,), jnp.float32) * std,
        "wk": jax.random.normal(kk, (CTX_DIM, HIDDEN), jnp.float32) * std,
        "bk": jax.random.normal(kbk, (HIDDEN,), jnp.float32) * std,
        "wv": jax.random.normal(kv, (CTX_DIM, HIDDEN), jnp.float32) * std,
        "bv": jax.random.normal(kbv, (HIDDEN,), jnp.float32) * std,
    }

    ctx_out, scores_out = bert_out_attention_pallas(
        hidden, context, attention_mask, params, num_heads=H, q_block=8)
    ctx_out = jax.block_until_ready(ctx_out)
    scores_out = jax.block_until_ready(scores_out)

    ctx_ref, scores_ref = bert_out_attention_ref(
        hidden, context, attention_mask, params, num_heads=H)

    # bf16 MXU path -> relaxed tolerance vs the f32 reference.
    if not jnp.allclose(ctx_out, ctx_ref, atol=2e-2, rtol=2e-2):
        raise AssertionError("Pallas context_layer does not match JAX reference")
    if not jnp.allclose(scores_out, scores_ref, atol=2e-2, rtol=2e-2):
        raise AssertionError("Pallas attention_scores do not match JAX reference")

    print("KERNEL_OK")
</pallas_src>

<mosaic_0001>
module attributes {stable_mosaic.version = 11 : i64} {
  func.func @_cross_attn_kernel(%arg0: i32, %arg1: i32, %arg2: i32, %arg3: memref<1x8x32xbf16, #tpu.memory_space<vmem>>, %arg4: memref<1x8x48xbf16, #tpu.memory_space<vmem>>, %arg5: memref<1x1x8xf32, #tpu.memory_space<vmem>>, %arg6: memref<1x32x8xbf16, #tpu.memory_space<vmem>>, %arg7: memref<1x1x8xf32, #tpu.memory_space<vmem>>, %arg8: memref<1x48x16xbf16, #tpu.memory_space<vmem>>, %arg9: memref<1x1x16xf32, #tpu.memory_space<vmem>>, %arg10: memref<1x1x8x8xf32, #tpu.memory_space<vmem>>, %arg11: memref<1x1x8x8xf32, #tpu.memory_space<vmem>>, %arg12: memref<8x8xbf16, #tpu.memory_space<vmem>>, %arg13: memref<8x8xbf16, #tpu.memory_space<vmem>>) attributes {dimension_semantics = [#tpu.dimension_semantics<parallel>, #tpu.dimension_semantics<parallel>, #tpu.dimension_semantics<arbitrary>], iteration_bounds = array<i64: 2, 4, 2>, scalar_prefetch = 0 : i64, scratch_operands = 2 : i64, tpu.core_type = #tpu.core_type<tc>, window_params = [{transform_indices = @transform_0, window_bounds = array<i64: 1, 8, 32>}, {transform_indices = @transform_1, window_bounds = array<i64: 1, 8, 48>}, {transform_indices = @transform_2, window_bounds = array<i64: 1, 1, 8>}, {transform_indices = @transform_3, window_bounds = array<i64: 1, 32, 8>}, {transform_indices = @transform_4, window_bounds = array<i64: 1, 1, 8>}, {transform_indices = @transform_5, window_bounds = array<i64: 1, 48, 16>}, {transform_indices = @transform_6, window_bounds = array<i64: 1, 1, 16>}, {transform_indices = @transform_7, window_bounds = array<i64: 1, 1, 8, 8>}, {transform_indices = @transform_8, window_bounds = array<i64: 1, 1, 8, 8>}]} {
    %c0_i32 = arith.constant 0 : i32
    %0 = arith.cmpi eq, %arg2, %c0_i32 : i32
    %1 = arith.extui %0 : i1 to i32
    %c0_i32_0 = arith.constant 0 : i32
    %2 = arith.cmpi ne, %1, %c0_i32_0 : i32
    scf.if %2 {
      %c0_28 = arith.constant 0 : index
      %c0_29 = arith.constant 0 : index
      %c0_30 = arith.constant 0 : index
      %38 = vector.load %arg4[%c0_28, %c0_29, %c0_30] : memref<1x8x48xbf16, #tpu.memory_space<vmem>>, vector<1x8x48xbf16>
      %39 = vector.shape_cast %38 : vector<1x8x48xbf16> to vector<8x48xbf16>
      %c0_31 = arith.constant 0 : index
      %c0_32 = arith.constant 0 : index
      %c0_33 = arith.constant 0 : index
      %40 = vector.load %arg8[%c0_31, %c0_32, %c0_33] : memref<1x48x16xbf16, #tpu.memory_space<vmem>>, vector<1x48x16xbf16>
      %41 = vector.shape_cast %40 : vector<1x48x16xbf16> to vector<48x16xbf16>
      %cst_34 = arith.constant dense<0.000000e+00> : vector<8x16xf32>
      %42 = tpu.matmul %39, %41, %cst_34 {dimension_numbers = #tpu.dot_dimension_numbers<[1], [0], [0], [1], [0, 0, 1, 1], [], []>} : vector<8x48xbf16>, vector<48x16xbf16>, vector<8x16xf32> -> vector<8x16xf32>
      %c0_35 = arith.constant 0 : index
      %c0_36 = arith.constant 0 : index
      %c0_37 = arith.constant 0 : index
      %43 = vector.load %arg9[%c0_35, %c0_36, %c0_37] : memref<1x1x16xf32, #tpu.memory_space<vmem>>, vector<1x1x16xf32>
      %44 = vector.shape_cast %43 : vector<1x1x16xf32> to vector<1x16xf32>
      %45 = vector.broadcast %44 : vector<1x16xf32> to vector<8x16xf32>
      %46 = arith.addf %42, %45 : vector<8x16xf32>
      %47 = vector.extract_strided_slice %46 {offsets = [0, 0], sizes = [8, 8], strides = [1, 1]} : vector<8x16xf32> to vector<8x8xf32>
      %48 = arith.truncf %47 : vector<8x8xf32> to vector<8x8xbf16>
      %c0_38 = arith.constant 0 : index
      %c0_39 = arith.constant 0 : index
      %49 = vector.load %arg12[%c0_38, %c0_39] : memref<8x8xbf16, #tpu.memory_space<vmem>>, vector<8x8xbf16>
      tpu.vector_store %arg12[%c0_38, %c0_39], %48 {strides = array<i32>} : memref<8x8xbf16, #tpu.memory_space<vmem>>, vector<8x8xbf16>,
      %50 = vector.extract_strided_slice %46 {offsets = [0, 8], sizes = [8, 8], strides = [1, 1]} : vector<8x16xf32> to vector<8x8xf32>
      %51 = arith.truncf %50 : vector<8x8xf32> to vector<8x8xbf16>
      %c0_40 = arith.constant 0 : index
      %c0_41 = arith.constant 0 : index
      %52 = vector.load %arg13[%c0_40, %c0_41] : memref<8x8xbf16, #tpu.memory_space<vmem>>, vector<8x8xbf16>
      tpu.vector_store %arg13[%c0_40, %c0_41], %51 {strides = array<i32>} : memref<8x8xbf16, #tpu.memory_space<vmem>>, vector<8x8xbf16>,
    } else {
    }
    %c0 = arith.constant 0 : index
    %c0_1 = arith.constant 0 : index
    %c0_2 = arith.constant 0 : index
    %3 = vector.load %arg3[%c0, %c0_1, %c0_2] : memref<1x8x32xbf16, #tpu.memory_space<vmem>>, vector<1x8x32xbf16>
    %4 = vector.shape_cast %3 : vector<1x8x32xbf16> to vector<8x32xbf16>
    %c0_3 = arith.constant 0 : index
    %c0_4 = arith.constant 0 : index
    %c0_5 = arith.constant 0 : index
    %5 = vector.load %arg6[%c0_3, %c0_4, %c0_5] : memref<1x32x8xbf16, #tpu.memory_space<vmem>>, vector<1x32x8xbf16>
    %6 = vector.shape_cast %5 : vector<1x32x8xbf16> to vector<32x8xbf16>
    %cst = arith.constant dense<0.000000e+00> : vector<8x8xf32>
    %7 = tpu.matmul %4, %6, %cst {dimension_numbers = #tpu.dot_dimension_numbers<[1], [0], [0], [1], [0, 0, 1, 1], [], []>} : vector<8x32xbf16>, vector<32x8xbf16>, vector<8x8xf32> -> vector<8x8xf32>
    %c0_6 = arith.constant 0 : index
    %c0_7 = arith.constant 0 : index
    %c0_8 = arith.constant 0 : index
    %8 = vector.load %arg7[%c0_6, %c0_7, %c0_8] : memref<1x1x8xf32, #tpu.memory_space<vmem>>, vector<1x1x8xf32>
    %9 = vector.shape_cast %8 : vector<1x1x8xf32> to vector<1x8xf32>
    %10 = vector.broadcast %9 : vector<1x8xf32> to vector<8x8xf32>
    %11 = arith.addf %7, %10 : vector<8x8xf32>
    %12 = arith.truncf %11 : vector<8x8xf32> to vector<8x8xbf16>
    %c0_9 = arith.constant 0 : index
    %c0_10 = arith.constant 0 : index
    %13 = vector.load %arg12[%c0_9, %c0_10] : memref<8x8xbf16, #tpu.memory_space<vmem>>, vector<8x8xbf16>
    %cst_11 = arith.constant dense<0.000000e+00> : vector<8x8xf32>
    %14 = tpu.matmul %12, %13, %cst_11 {dimension_numbers = #tpu.dot_dimension_numbers<[1], [1], [0], [0], [0, 0, 1, 0], [], []>} : vector<8x8xbf16>, vector<8x8xbf16>, vector<8x8xf32> -> vector<8x8xf32>
    %c0_12 = arith.constant 0 : index
    %c0_13 = arith.constant 0 : index
    %c0_14 = arith.constant 0 : index
    %15 = vector.load %arg5[%c0_12, %c0_13, %c0_14] : memref<1x1x8xf32, #tpu.memory_space<vmem>>, vector<1x1x8xf32>
    %16 = vector.shape_cast %15 : vector<1x1x8xf32> to vector<1x8xf32>
    %17 = vector.broadcast %16 : vector<1x8xf32> to vector<8x8xf32>
    %18 = arith.addf %14, %17 : vector<8x8xf32>
    %c0_15 = arith.constant 0 : index
    %c0_16 = arith.constant 0 : index
    %c0_17 = arith.constant 0 : index
    %c0_18 = arith.constant 0 : index
    %19 = vector.load %arg11[%c0_15, %c0_16, %c0_17, %c0_18] : memref<1x1x8x8xf32, #tpu.memory_space<vmem>>, vector<1x1x8x8xf32>
    %20 = vector.shape_cast %19 : vector<1x1x8x8xf32> to vector<8x8xf32>
    %21 = vector.shape_cast %18 : vector<8x8xf32> to vector<1x1x8x8xf32>
    tpu.vector_store %arg11[%c0_15, %c0_16, %c0_17, %c0_18], %21 {strides = array<i32>} : memref<1x1x8x8xf32, #tpu.memory_space<vmem>>, vector<1x1x8x8xf32>,
    %cst_19 = arith.constant dense<0xFF800000> : vector<8xf32>
    %22 = vector.multi_reduction <maximumf>, %18, %cst_19 [1] : vector<8x8xf32> to vector<8xf32>
    %23 = vector.shape_cast %22 : vector<8xf32> to vector<8x1xf32>
    %24 = vector.broadcast %23 : vector<8x1xf32> to vector<8x8xf32>
    %25 = arith.subf %18, %24 : vector<8x8xf32>
    %26 = math.exp %25 : vector<8x8xf32>
    %cst_20 = arith.constant dense<0.000000e+00> : vector<8xf32>
    %27 = vector.multi_reduction <add>, %26, %cst_20 [1] : vector<8x8xf32> to vector<8xf32>
    %28 = vector.shape_cast %27 : vector<8xf32> to vector<8x1xf32>
    %29 = tpu.reciprocal %28 {approx = true} : vector<8x1xf32> -> vector<8x1xf32>
    %30 = vector.broadcast %29 : vector<8x1xf32> to vector<8x8xf32>
    %31 = arith.mulf %26, %30 : vector<8x8xf32>
    %32 = arith.truncf %31 : vector<8x8xf32> to vector<8x8xbf16>
    %c0_21 = arith.constant 0 : index
    %c0_22 = arith.constant 0 : index
    %33 = vector.load %arg13[%c0_21, %c0_22] : memref<8x8xbf16, #tpu.memory_space<vmem>>, vector<8x8xbf16>
    %cst_23 = arith.constant dense<0.000000e+00> : vector<8x8xf32>
    %34 = tpu.matmul %32, %33, %cst_23 {dimension_numbers = #tpu.dot_dimension_numbers<[1], [0], [0], [1], [0, 0, 1, 1], [], []>} : vector<8x8xbf16>, vector<8x8xbf16>, vector<8x8xf32> -> vector<8x8xf32>
    %c0_24 = arith.constant 0 : index
    %c0_25 = arith.constant 0 : index
    %c0_26 = arith.constant 0 : index
    %c0_27 = arith.constant 0 : index
    %35 = vector.load %arg10[%c0_24, %c0_25, %c0_26, %c0_27] : memref<1x1x8x8xf32, #tpu.memory_space<vmem>>, vector<1x1x8x8xf32>
    %36 = vector.shape_cast %35 : vector<1x1x8x8xf32> to vector<8x8xf32>
    %37 = vector.shape_cast %34 : vector<8x8xf32> to vector<1x1x8x8xf32>
    tpu.vector_store %arg10[%c0_24, %c0_25, %c0_26, %c0_27], %37 {strides = array<i32>} : memref<1x1x8x8xf32, #tpu.memory_space<vmem>>, vector<1x1x8x8xf32>,
    return
  }
  func.func @transform_0(%arg0: i32, %arg1: i32, %arg2: i32) -> (i32, i32, i32) {
    %c0_i32 = arith.constant 0 : i32
    %c0_i32_0 = arith.constant 0 : i32
    return %arg0, %arg2, %c0_i32 : i32, i32, i32
  }
  func.func @transform_1(%arg0: i32, %arg1: i32, %arg2: i32) -> (i32, i32, i32) {
    %c0_i32 = arith.constant 0 : i32
    %c0_i32_0 = arith.constant 0 : i32
    %c0_i32_1 = arith.constant 0 : i32
    return %arg0, %c0_i32, %c0_i32_0 : i32, i32, i32
  }
  func.func @transform_2(%arg0: i32, %arg1: i32, %arg2: i32) -> (i32, i32, i32) {
    %c0_i32 = arith.constant 0 : i32
    %c0_i32_0 = arith.constant 0 : i32
    %c0_i32_1 = arith.constant 0 : i32
    return %arg0, %c0_i32, %c0_i32_0 : i32, i32, i32
  }
  func.func @transform_3(%arg0: i32, %arg1: i32, %arg2: i32) -> (i32, i32, i32) {
    %c0_i32 = arith.constant 0 : i32
    %c0_i32_0 = arith.constant 0 : i32
    %c0_i32_1 = arith.constant 0 : i32
    return %arg1, %c0_i32, %c0_i32_0 : i32, i32, i32
  }
  func.func @transform_4(%arg0: i32, %arg1: i32, %arg2: i32) -> (i32, i32, i32) {
    %c0_i32 = arith.constant 0 : i32
    %c0_i32_0 = arith.constant 0 : i32
    %c0_i32_1 = arith.constant 0 : i32
    return %arg1, %c0_i32, %c0_i32_0 : i32, i32, i32
  }
  func.func @transform_5(%arg0: i32, %arg1: i32, %arg2: i32) -> (i32, i32, i32) {
    %c0_i32 = arith.constant 0 : i32
    %c0_i32_0 = arith.constant 0 : i32
    %c0_i32_1 = arith.constant 0 : i32
    return %arg1, %c0_i32, %c0_i32_0 : i32, i32, i32
  }
  func.func @transform_6(%arg0: i32, %arg1: i32, %arg2: i32) -> (i32, i32, i32) {
    %c0_i32 = arith.constant 0 : i32
    %c0_i32_0 = arith.constant 0 : i32
    %c0_i32_1 = arith.constant 0 : i32
    return %arg1, %c0_i32, %c0_i32_0 : i32, i32, i32
  }
  func.func @transform_7(%arg0: i32, %arg1: i32, %arg2: i32) -> (i32, i32, i32, i32) {
    %c0_i32 = arith.constant 0 : i32
    %c0_i32_0 = arith.constant 0 : i32
    return %arg0, %arg1, %arg2, %c0_i32 : i32, i32, i32, i32
  }
  func.func @transform_8(%arg0: i32, %arg1: i32, %arg2: i32) -> (i32, i32, i32, i32) {
    %c0_i32 = arith.constant 0 : i32
    %c0_i32_0 = arith.constant 0 : i32
    return %arg0, %arg1, %arg2, %c0_i32 : i32, i32, i32, i32
  }
}

</mosaic_0001>

<bundles_post_ra>
// kernel: tpu_custom_call.1
= control target key start
LH: loop header
LB: loop body
LE: loop exit
PB: predicated region body
PF: predicated region fallthrough
CT: control target
= control target key end

     0   :  { %s1248_s27 = smov 0   ;;  %s1250_s28 = smov 0   ;;  %s1393_s0 = inlined_call_operand.vmem [shape: bf16[2,16,32], index: 0, kind: input, shape index: {}]   ;;  %s1394_s1 = inlined_call_operand.vmem [shape: bf16[2,8,48], index: 1, kind: input, shape index: {}]   ;;  %s1395_s2 = inlined_call_operand.vmem [shape: f32[2,1,8], index: 2, kind: input, shape index: {}]   ;;  %s1396_s3 = inlined_call_operand.vmem [shape: bf16[4,32,8], index: 3, kind: input, shape index: {}]   ;;  %s1397_s4 = inlined_call_operand.vmem [shape: f32[4,1,8], index: 4, kind: input, shape index: {}]   ;;  %s1398_s5 = inlined_call_operand.vmem [shape: bf16[4,48,16], index: 5, kind: input, shape index: {}]   ;;  %s1399_s6 = inlined_call_operand.vmem [shape: f32[4,1,16], index: 6, kind: input, shape index: {}]   ;;  %s1400_s7 = inlined_call_operand.vmem [shape: f32[2,4,16,8], index: 7, kind: output, shape index: {0}]   ;;  %s1401_s8 = inlined_call_operand.vmem [shape: f32[2,4,16,8], index: 8, kind: output, shape index: {1}]  }
   0x1   :  { %1406 = sst [smem:[#allocation11_spill]] %s1393_s0  ;;  %s1252_s29 = smov 0  }
   0x2   :  { %1407 = sst [smem:[#allocation12_spill]] %s1394_s1  ;;  %s1254_s30 = smov 0  }
   0x3   :  { %1408 = sst [smem:[#allocation13_spill]] %s1395_s2  ;;  %s1256_s9 = smov 0  }
   0x4   :  { %s1258_s10 = smov 0   ;;  %s1260_s11 = smov 0  }
   0x5 LB: > { %1409 = sst [smem:[#allocation4_spill]] %s1184_s30  ;;  %s31_s12 = sadd.s32 1, %s1184_s30  ;;  %s1196_s11 = sphi %s1260_s11, %s19_s11   ;;  %s1192_s10 = sphi %s1258_s10, %s1428_s10   ;;  %s1188_s9 = sphi %s1256_s9, %s1427_s9   ;;  %s1184_s30 = sphi %s1254_s30, %s1426_s30   ;;  %s1180_s29 = sphi %s1252_s29, %s1425_s29   ;;  %s1176_s28 = sphi %s1250_s28, %s1424_s28   ;;  %s1172_s27 = sphi %s1248_s27, %s1423_s27  }
   0x6   : > { %1410 = sst [smem:[#allocation5_spill]] %s1188_s9  ;;  %p32_p0 = scmp.ge.s32.totalorder %s31_s12, 2 }
   0x7   : > { %1411 = sst [smem:[#allocation6_spill]] %s1192_s10  ;;  %s34_s13 = sadd.s32 1, %s1188_s9 }
   0x8   : > { %1412 = sst [smem:[#allocation7_spill]] %s1196_s11  ;;  %p999_p1 = scmp.ge.s32.totalorder %s1196_s11, 1 }
   0x9   : > { %p350_p2 = scmp.lt.s32.totalorder %s1196_s11, 17  ;;  %s1430_s12 = smov (%p32_p0, %s31_s12), 0 }
   0xa   : > { %1413 = sst [smem:[#allocation8_spill]] %s1430_s12  ;;  %s1432_s13 = smov (!%p32_p0, %s34_s13), %s1188_s9 }
   0xb   : > { %p351_p3 = pnand %p999_p1, %p350_p2  ;;  %p36_p4 = scmp.ge.s32.totalorder %s1432_s13, 4 }
   0xc   : > { %s38_s14 = sadd.s32 1, %s1192_s10  ;;  %p429_p6 = scmp.lt.s32.totalorder (!%p351_p3), %s1180_s29, 1 }
   0xd   : > { %s1434_s13 = smov (%p36_p4, %s1432_s13), 0  ;;  %s1436_s14 = smov (!%p36_p4, %s38_s14), %s1192_s10 }
   0xe   : > { %1414 = sst [smem:[#allocation9_spill]] %s1434_s13  ;;  %p40_p5 = scmp.ge.s32.totalorder %s1436_s14, 2 }
   0xf   : > { %354 = sbr.rel (%p351_p3) target bundleno = 1345 (0x541), region = 48  ;;  %p431_p7 = scmp.lt.s32.totalorder (!%p351_p3), %s1172_s27, 1 }
  0x10   : > { %s1438_s14 = smov (%p40_p5, %s1436_s14), 0  ;;  %p444_p8 = scmp.lt.s32.totalorder (!%p351_p3), %s1176_s28, 3 }
  0x11   : > { %1415 = sst [smem:[#allocation10_spill]] %s1438_s14  ;;  %s1416_s1 = sld [smem:[#allocation12_spill]] (!%p351_p3) }
  0x12   : > { %s1418_s0 = sld [smem:[#allocation11_spill]] (!%p351_p3)  ;;  %p1012_p9 = scmp.ne.s32.totalorder (!%p351_p3), %s1172_s27, 0 }
  0x16   : > { %s1440_s29 = smov (!%p429_p6, %s1180_s29), 1  ;;  %s1442_s28 = smov (!%p444_p8, %s1176_s28), 3 }
  0x17   : > { %s432_s15 = scalar_select %p431_p7, %s1172_s27, 1 }
  0x18   : > { %s1000_s16 = sshll.u32 %s1440_s29, 1  ;;  %s1002_s17 = sshll.u32 %s1440_s29, 2  ;;  %v1198_v1 = vmov (!%p1012_p9), 0.0   ;;  %vm1199_vm0 = vmmov (!%p1012_p9), 0   ;;  %vm521_vm1 = vcmask (!%p1012_p9), 392192   ;;  %vm566_vm2 = vcmask (!%p1012_p9), 60416  }
  0x19   : > { %s434_s18 = sadd.s32 %s1000_s16, %s432_s15  ;;  %s1304_s21 = scalar_lea.vmem %s1416_s1, %s1002_s17  ;;  %1041 = vmatprep.subr.bf16.mxu0 (!%p1012_p9), %v1198_v1  ;;  %1047 = vmatprep.mubr.msk.bf16.mxu0 (!%p1012_p9), %vm1199_vm0, %v1198_v1 }
  0x1a   : > { %s1001_s22 = sshll.u32 %s434_s18, 2  ;;  %s1007_s16 = sshll.u32 %s1440_s29, 3  ;;  %v489_v4 = vld [vmem:[%s1304_s21] sm:$0xf] (!%p1012_p9) }
  0x1b   : > { %s1313_s13 = scalar_lea.vmem %s1418_s0, %s1001_s22  ;;  %s1028_s17 = sshll.u32 %s1442_s28, 4 }
  0x1c   : > { %s1327_s25 = scalar_lea.vmem %s1396_s3, %s1028_s17  ;;  %s1071_s14 = smul.u32 24, %s1442_s28 }
  0x1d   : > { %s459_s0 = scalar_lea.vmem %s1399_s6, %s1442_s28  ;;  %s1006_s1 = sshll.u32 %s1442_s28, 1 }
  0x1e   : > { %s456_s9 = scalar_lea.vmem %s1398_s5, %s1071_s14  ;;  %s467_s30 = sadd.s32 %s1006_s1, %s432_s15  ;;  %v1013_v5 = vld [vmem:[%s459_s0] ss:$0 sm:$0xff] (!%p1012_p9) }
  0x1f   : > { %s469_s11 = sadd.s32 %s1007_s16, %s467_s30  ;;  %488 = sbr.rel (%p1012_p9) target bundleno = 375 (0x177), region = 52  ;;  %v1133_v0 = vld [vmem:[%s456_s9] sm:$0xff] (!%p1012_p9)   ;;  %v1134_v2 = vld [vmem:[%s456_s9 + $0x8] sm:$0xff] (!%p1012_p9)   ;;  %v1135_v3 = vld [vmem:[%s456_s9 + $0x10] sm:$0xff] (!%p1012_p9)  }
  0x20   : > { %s1008_s2 = sshll.u32 %s469_s11, 3  ;;  %1042 = vmatpush3.bf16.msra.mxu0 (!%p1012_p9), %v1133_v0  ;;  %s1200_s1 = smov (!%p1012_p9), 120  }
  0x21   : > { %s1341_s20 = scalar_lea.vmem %s1400_s7, %s1008_s2  ;;  %s1346_s24 = scalar_lea.vmem %s1401_s8, %s1008_s2  ;;  %1043 = vmatprep.subr.bf16.mxu0 (!%p1012_p9), %v1198_v1 }
  0x24   : > { %1044 = vmatpush3.bf16.msra.mxu0 (!%p1012_p9), %v1134_v2 }
  0x25   : > { %1045 = vmatprep.subr.bf16.mxu0 (!%p1012_p9), %v1198_v1 }
  0x28   : > { %1046 = vmatpush3.bf16.msra.mxu0 %v1135_v3 }
  0x2b   : > { %1048 = vmatmul.mubr.msk.bf16.vlgmr.msra.gmra.mrb[0].mxu0 %vm521_vm1, %v489_v4 }
  0xfe   : > { %v559_v6 = vpop.f32.mrb[0].mxu0 }
  0xff   : > { %v560_v7 = vadd.f32 %v1013_v5, %v559_v6  ;;  %v1049_v8 = vpop.f32.mrb[1].mxu0 }
 0x100   : > { %v562_v9 = vpop.f32.mrb[2].mxu0 }
 0x101   : > { %v565_v10 = vpack.c.bf16 %v560_v7, %v560_v7  ;;  %v1050_v11 = vpop.f32.mrb[3].mxu0 }
 0x103   : > { %571 = vrot.lane.b32.xlu0 %v565_v10, %s1200_s1  ;;  %567 = vst.msk [vmem:[#allocation2] sm:$0xf] %vm566_vm2, %v565_v10 }
 0x175   : > { %v572_v12 = vpop.permute.xlu0 %571 }
 0x176   : > { %574 = vst.msk [vmem:[#allocation3] sm:$0xf] %vm566_vm2, %v572_v12 }
 0x177 PF: > { %v1136_v13 = vld [vmem:[%s1327_s25] sm:$0xff]   ;;  %v1201_v14 = vmov 0.0   ;;  %v1137_v15 = vld [vmem:[%s1327_s25 + $0x8] sm:$0xff]   ;;  %vm1202_vm3 = vmmov 0   ;;  %vm652_vm4 = vcmask 64512   ;;  %vm599_vm5 = vcmask 261120   ;;  %s1419_s27 = scalar_lea.vmem %s1397_s4, %s1442_s28 }
 0x178   : > { %1051 = vmatprep.subr.bf16.mxu0 %v1201_v14  ;;  %1059 = vmatprep.subr.bf16.mxu1 %v1201_v14  ;;  %v644_v16 = vld [vmem:[#allocation2] sm:$0xf]  ;;  %s1420_s10 = sld [smem:[#allocation13_spill]]  ;;  %vm716_vm6 = vcmask 1043456  }
 0x179   : > { %1052 = vmatpush3.bf16.msra.mxu0 %v1136_v13  ;;  %1055 = vmatprep.mubr.msk.bf16.mxu0 %vm1202_vm3, %v1201_v14  ;;  %v657_v17 = vsel %vm652_vm4, %v644_v16, 0  ;;  %v575_v18 = vld [vmem:[%s1313_s13] sm:$0xf] }
 0x17a   : > { %1053 = vmatprep.subr.bf16.mxu0 %v1201_v14  ;;  %1061 = vmatprep.mubr.msk.bf16.mxu1 %vm1202_vm3, %v1201_v14  ;;  %v1019_v19 = vld [vmem:[%s1419_s27] ss:$0 sm:$0xff] }
 0x17b   : > { %1060 = vmatpush3.bf16.xpose.msra.mxu1 %v657_v17 }
 0x17d   : > { %1054 = vmatpush3.bf16.msra.mxu0 %v1137_v15  ;;  %v712_v38 = vld [vmem:[#allocation3] sm:$0xf] }
 0x17e   : > { %1065 = vmatprep.subr.bf16.mxu0 %v1201_v14  ;;  %s1421_s11 = scalar_lea.vmem %s1420_s10, %s1440_s29  ;;  %v718_v39 = vsel %vm716_vm6, %v712_v38, 0 }
 0x17f   : > { %v1023_v26 = vld [vmem:[%s1421_s11] ss:$0 sm:$0xff] }
 0x180   : > { %1056 = vmatmul.mubr.msk.bf16.vlgmr.msra.gmra.mrb[0].mxu0 %vm599_vm5, %v575_v18 }
 0x181   : > { %1067 = vmatprep.mubr.msk.bf16.mxu0 %vm1202_vm3, %v1201_v14  ;;  %1066 = vmatpush3.bf16.msra.mxu0 %v718_v39 }
 0x253   : > { %v637_v20 = vpop.f32.mrb[0].mxu0 }
 0x254   : > { %v638_v21 = vadd.f32 %v1019_v19, %v637_v20  ;;  %v1057_v22 = vpop.f32.mrb[1].mxu0 }
 0x255   : > { %v640_v23 = vpop.f32.mrb[2].mxu0 }
 0x256   : > { %v643_v24 = vpack.c.bf16 %v638_v21, %v638_v21  ;;  %v1058_v25 = vpop.f32.mrb[3].mxu0 }
 0x258   : > { %1062 = vmatmul.mubr.msk.bf16.vlgmr.msra.gmra.mrb[0].mxu1 %vm652_vm4, %v643_v24 }
 0x32b   : > { %v693_v27 = vpop.f32.mrb[0].mxu1 }
 0x32c   : > { %v694_v28 = vadd.f32 %v1023_v26, %v693_v27  ;;  %v1063_v29 = vpop.f32.mrb[1].mxu1 }
 0x32d   : > { %v696_v30 = vpop.f32.mrb[2].mxu1 }
 0x32e   : > { %699 = vst.msk [vmem:[%s1346_s24] sm:$0xff] %vm652_vm4, %v694_v28  ;;  %v1064_v31 = vpop.f32.mrb[3].mxu1  ;;  %v700_v32 = vsel %vm652_vm4, %v694_v28, -inf }
 0x32f   : > { %701 = vmax.xlane.f32.xlu0 %v700_v32 }
 0x3bc   : > { %v702_v33 = vpop.xlane.xlu0 %701 }
 0x3bd   : > { %v703_v34 = vsub.f32 %v694_v28, %v702_v33 }
 0x3bf   : > { %v704_v35 = vmul.f32 1.442695, %v703_v34 }
 0x3c1   : > { %1138 = vpow2.f32 %v704_v35 }
 0x3cb   : > { %v1139_v36 = vpop.eup %1138 }
 0x3cc   : > { %v706_v37 = vsel %vm652_vm4, %v1139_v36, 0.0 }
 0x3cd   : > { %707 = vadd.xlane.f32.xlu0 %v706_v37 }
 0x45a   : > { %v708_v40 = vpop.xlane.xlu0 %707 }
 0x45b   : > { %1140 = vrcp.f32 %v708_v40 }
 0x465   : > { %v1141_v41 = vpop.eup %1140 }
 0x466   : > { %v710_v42 = vmul.f32 %v1141_v41, %v1139_v36 }
 0x468   : > { %v711_v43 = vpack.c.bf16 %v710_v42, %v710_v42 }
 0x46a   : > { %1068 = vmatmul.mubr.msk.bf16.vlgmr.msra.gmra.mrb[4].mxu0 %vm652_vm4, %v711_v43 }
 0x53d   : > { %v754_v44 = vpop.f32.mrb[4].mxu0 }
 0x53e   : > { %760 = vst.msk [vmem:[%s1341_s20] sm:$0xff] %vm652_vm4, %v754_v44  ;;  %v1069_v45 = vpop.f32.mrb[5].mxu0 }
 0x53f   : > { %v757_v46 = vpop.f32.mrb[6].mxu0 }
 0x540   : > { %v1070_v47 = vpop.f32.mrb[7].mxu0 }
 0x541 PF: > { %s1422_s28 = sld [smem:[#allocation7_spill]]  ;;  %s1423_s27 = sld [smem:[#allocation4_spill]] }
 0x542   : > { %s1425_s29 = sld [smem:[#allocation6_spill]]  ;;  %s1426_s30 = sld [smem:[#allocation8_spill]] }
 0x543   : > { %s1427_s9 = sld [smem:[#allocation9_spill]]  ;;  %s1428_s10 = sld [smem:[#allocation10_spill]] }
 0x547   : > { %s19_s11 = sadd.s32 1, %s1422_s28   ;;  %s1424_s28 = sld [smem:[#allocation5_spill]] }
 0x548   : > { %p16_p10 = scmp.ge.s32.totalorder %s19_s11, 18  }
 0x54a   :  { %18 = sbr.rel (!%p16_p10) target bundleno = 5 (0x5), region = 112 }

</bundles_post_ra>
